<compile_context>
chip_gen: v6e
topology: v6e:2x2x1
jax: 0.10.0
libtpu: 0.0.40
codegen_flags: <defaults>
</compile_context>

<pallas_src>
import functools

import jax
import jax.numpy as jnp
from jax import lax
from jax.experimental import pallas as pl
from jax.experimental.pallas import tpu as pltpu


def _mha_kernel(x_ref, wqkv_ref, bqkv_ref, wo_ref, bo_ref, o_ref, *,
                n_heads, att_size, scale):
    x = x_ref[...]                                   # (S, E)

    # One fused QKV projection: (S, E) @ (E, 3*H*E) -> (S, 3*H*E), lane-dense.
    qkv = jnp.dot(x, wqkv_ref[...],
                  preferred_element_type=jnp.float32) + bqkv_ref[...]

    he = n_heads * att_size
    q = qkv[:, 0 * he:1 * he] * scale                # (S, H*E)
    k = qkv[:, 1 * he:2 * he]                        # (S, H*E)
    v = qkv[:, 2 * he:3 * he]                        # (S, H*E)

    # Per-head attention (static unrolled loop, H is tiny). Column block
    # [h*E:(h+1)*E] of q/k/v is exactly head h (matches the PyTorch .view).
    head_outs = []
    for h in range(n_heads):
        lo, hi = h * att_size, (h + 1) * att_size
        q_h, k_h, v_h = q[:, lo:hi], k[:, lo:hi], v[:, lo:hi]
        # a_h = q_h @ k_h^T -> (S, S). No softmax (matches the module).
        a_h = lax.dot_general(q_h, k_h, (((1,), (1,)), ((), ())),
                              preferred_element_type=jnp.float32)
        # TODO(synk): att_dropout is identity in eval mode; training-time dropout not implemented.
        head_outs.append(jnp.dot(a_h, v_h,
                                 preferred_element_type=jnp.float32))  # (S, E)

    # Lane-dense concat (S, H*E=128) then ONE output projection matmul.
    y = jnp.concatenate(head_outs, axis=-1)          # (S, H*E)
    out = jnp.dot(y, wo_ref[...],
                  preferred_element_type=jnp.float32) + bo_ref[...]    # (S, E)

    o_ref[...] = out.astype(o_ref.dtype)


def multi_head_attention(x, params):
    """x: (B, S, E) float32. params: dict of projection weights/biases."""
    B, S, E = x.shape
    wq, wk, wv = params["wq"], params["wk"], params["wv"]   # (E, H*E)
    bq, bk, bv = params["bq"], params["bk"], params["bv"]   # (H*E,)
    wo, bo = params["wo"], params["bo"]                     # (H*E, E), (E,)
    H = wq.shape[1] // E
    scale = float(E) ** (-0.5)

    # Host-side packing: one fused QKV weight / bias, everything 2-D.
    wqkv = jnp.concatenate([wq, wk, wv], axis=1)            # (E, 3*H*E)
    bqkv = jnp.concatenate([bq, bk, bv]).reshape(1, 3 * H * E)
    bo_r = bo.reshape(1, E)

    kernel = functools.partial(_mha_kernel, n_heads=H, att_size=E, scale=scale)

    grid_spec = pltpu.PrefetchScalarGridSpec(
        num_scalar_prefetch=0,
        grid=(B,),
        in_specs=[
            # x: one (S, E) slice per grid step (batch dim squeezed).
            pl.BlockSpec((None, S, E), lambda b: (b, 0, 0)),
            # Weights / biases: full-array blocks, VMEM-resident, DMA'd once.
            pl.BlockSpec((E, 3 * H * E), lambda b: (0, 0)),   # wqkv
            pl.BlockSpec((1, 3 * H * E), lambda b: (0, 0)),   # bqkv
            pl.BlockSpec((H * E, E), lambda b: (0, 0)),       # wo
            pl.BlockSpec((1, E), lambda b: (0, 0)),           # bo
        ],
        out_specs=pl.BlockSpec((None, S, E), lambda b: (b, 0, 0)),
    )

    # Advisory cost estimate for XLA's scheduler.
    flops = B * (2 * S * E * (3 * H * E)        # fused QKV projection
                 + H * 2 * S * S * E            # q @ k^T
                 + H * 2 * S * S * E            # a @ v
                 + 2 * S * (H * E) * E)         # output projection
    bytes_accessed = 4 * (B * S * E             # x
                          + E * 3 * H * E + 3 * H * E   # wqkv, bqkv
                          + H * E * E + E       # wo, bo
                          + B * S * E)          # output
    cost = pl.CostEstimate(flops=int(flops), transcendentals=0,
                           bytes_accessed=int(bytes_accessed))

    return pl.pallas_call(
        kernel,
        out_shape=jax.ShapeDtypeStruct((B, S, E), jnp.float32),
        grid_spec=grid_spec,
        cost_estimate=cost,
        compiler_params=pltpu.CompilerParams(
            dimension_semantics=("parallel",)),
    )(x, wqkv, bqkv, wo, bo_r)


def reference_forward(x, params):
    """Pure-JAX replica of the PyTorch forward (eval mode)."""
    B, S, E = x.shape
    H = params["wq"].shape[1] // E
    scale = float(E) ** (-0.5)
    q = (x @ params["wq"] + params["bq"]).reshape(B, S, H, E).transpose(0, 2, 1, 3)
    k = (x @ params["wk"] + params["bk"]).reshape(B, S, H, E).transpose(0, 2, 1, 3)
    v = (x @ params["wv"] + params["bv"]).reshape(B, S, H, E).transpose(0, 2, 1, 3)
    q = q * scale
    a = jnp.einsum("bhse,bhte->bhst", q, k)
    y = jnp.einsum("bhst,bhte->bhse", a, v)
    y = y.transpose(0, 2, 1, 3).reshape(B, S, H * E)
    return y @ params["wo"] + params["bo"]


def init_params(key, E, H):
    ks = jax.random.split(key, 8)
    # Deterministic synthetic init (xavier-ish scaling); not a checkpoint load.
    s_in = (2.0 / (E + H * E)) ** 0.5
    return {
        "wq": jax.random.normal(ks[0], (E, H * E), jnp.float32) * s_in,
        "wk": jax.random.normal(ks[1], (E, H * E), jnp.float32) * s_in,
        "wv": jax.random.normal(ks[2], (E, H * E), jnp.float32) * s_in,
        "bq": jax.random.normal(ks[3], (H * E,), jnp.float32) * 0.01,
        "bk": jax.random.normal(ks[4], (H * E,), jnp.float32) * 0.01,
        "bv": jax.random.normal(ks[5], (H * E,), jnp.float32) * 0.01,
        "wo": jax.random.normal(ks[6], (H * E, E), jnp.float32) * s_in,
        "bo": jax.random.normal(ks[7], (E,), jnp.float32) * 0.01,
    }


if __name__ == "__main__":
    B, S, E, H = 2, 8, 32, 4   # batch, seq, embedding_size, n_heads
    key = jax.random.PRNGKey(0)
    kx, kp = jax.random.split(key)
    x = jax.random.normal(kx, (B, S, E), jnp.float32)
    params = init_params(kp, E, H)

    out = multi_head_attention(x, params)
    out = jax.block_until_ready(out)

    ref = reference_forward(x, params)
    assert out.shape == (B, S, E)
    assert jnp.allclose(out, ref, atol=1e-4, rtol=1e-4), "mismatch vs JAX reference"

    print("KERNEL_OK")
</pallas_src>

<mosaic_0001>
module attributes {stable_mosaic.version = 11 : i64} {
  func.func @_mha_kernel(%arg0: i32, %arg1: memref<1x8x32xf32, #tpu.memory_space<vmem>>, %arg2: memref<32x384xf32, #tpu.memory_space<vmem>>, %arg3: memref<1x384xf32, #tpu.memory_space<vmem>>, %arg4: memref<128x32xf32, #tpu.memory_space<vmem>>, %arg5: memref<1x32xf32, #tpu.memory_space<vmem>>, %arg6: memref<1x8x32xf32, #tpu.memory_space<vmem>>) attributes {dimension_semantics = [#tpu.dimension_semantics<parallel>], iteration_bounds = array<i64: 2>, scalar_prefetch = 0 : i64, scratch_operands = 0 : i64, tpu.core_type = #tpu.core_type<tc>, window_params = [{transform_indices = @transform_0, window_bounds = array<i64: 1, 8, 32>}, {pipeline_mode = #tpu.pipeline_mode<synchronous>, transform_indices = @transform_1, window_bounds = array<i64: 32, 384>}, {pipeline_mode = #tpu.pipeline_mode<synchronous>, transform_indices = @transform_2, window_bounds = array<i64: 1, 384>}, {pipeline_mode = #tpu.pipeline_mode<synchronous>, transform_indices = @transform_3, window_bounds = array<i64: 128, 32>}, {pipeline_mode = #tpu.pipeline_mode<synchronous>, transform_indices = @transform_4, window_bounds = array<i64: 1, 32>}, {transform_indices = @transform_5, window_bounds = array<i64: 1, 8, 32>}]} {
    %c0 = arith.constant 0 : index
    %c0_0 = arith.constant 0 : index
    %c0_1 = arith.constant 0 : index
    %0 = vector.load %arg1[%c0, %c0_0, %c0_1] : memref<1x8x32xf32, #tpu.memory_space<vmem>>, vector<1x8x32xf32>
    %1 = vector.shape_cast %0 : vector<1x8x32xf32> to vector<8x32xf32>
    %c0_2 = arith.constant 0 : index
    %c0_3 = arith.constant 0 : index
    %2 = vector.load %arg2[%c0_2, %c0_3] : memref<32x384xf32, #tpu.memory_space<vmem>>, vector<32x384xf32>
    %cst = arith.constant dense<0.000000e+00> : vector<8x384xf32>
    %3 = tpu.matmul %1, %2, %cst {dimension_numbers = #tpu.dot_dimension_numbers<[1], [0], [0], [1], [0, 0, 1, 1], [], []>} : vector<8x32xf32>, vector<32x384xf32>, vector<8x384xf32> -> vector<8x384xf32>
    %c0_4 = arith.constant 0 : index
    %c0_5 = arith.constant 0 : index
    %4 = vector.load %arg3[%c0_4, %c0_5] : memref<1x384xf32, #tpu.memory_space<vmem>>, vector<1x384xf32>
    %5 = vector.broadcast %4 : vector<1x384xf32> to vector<8x384xf32>
    %6 = arith.addf %3, %5 : vector<8x384xf32>
    %7 = vector.extract_strided_slice %6 {offsets = [0, 0], sizes = [8, 128], strides = [1, 1]} : vector<8x384xf32> to vector<8x128xf32>
    %cst_6 = arith.constant 0.176776692 : f32
    %8 = vector.broadcast %cst_6 : f32 to vector<8x128xf32>
    %9 = arith.mulf %7, %8 : vector<8x128xf32>
    %10 = vector.extract_strided_slice %6 {offsets = [0, 128], sizes = [8, 128], strides = [1, 1]} : vector<8x384xf32> to vector<8x128xf32>
    %11 = vector.extract_strided_slice %6 {offsets = [0, 256], sizes = [8, 128], strides = [1, 1]} : vector<8x384xf32> to vector<8x128xf32>
    %12 = vector.extract_strided_slice %9 {offsets = [0, 0], sizes = [8, 32], strides = [1, 1]} : vector<8x128xf32> to vector<8x32xf32>
    %13 = vector.extract_strided_slice %10 {offsets = [0, 0], sizes = [8, 32], strides = [1, 1]} : vector<8x128xf32> to vector<8x32xf32>
    %14 = vector.extract_strided_slice %11 {offsets = [0, 0], sizes = [8, 32], strides = [1, 1]} : vector<8x128xf32> to vector<8x32xf32>
    %cst_7 = arith.constant dense<0.000000e+00> : vector<8x8xf32>
    %15 = tpu.matmul %12, %13, %cst_7 {dimension_numbers = #tpu.dot_dimension_numbers<[1], [1], [0], [0], [0, 0, 1, 0], [], []>} : vector<8x32xf32>, vector<8x32xf32>, vector<8x8xf32> -> vector<8x8xf32>
    %cst_8 = arith.constant dense<0.000000e+00> : vector<8x32xf32>
    %16 = tpu.matmul %15, %14, %cst_8 {dimension_numbers = #tpu.dot_dimension_numbers<[1], [0], [0], [1], [0, 0, 1, 1], [], []>} : vector<8x8xf32>, vector<8x32xf32>, vector<8x32xf32> -> vector<8x32xf32>
    %17 = vector.extract_strided_slice %9 {offsets = [0, 32], sizes = [8, 32], strides = [1, 1]} : vector<8x128xf32> to vector<8x32xf32>
    %18 = vector.extract_strided_slice %10 {offsets = [0, 32], sizes = [8, 32], strides = [1, 1]} : vector<8x128xf32> to vector<8x32xf32>
    %19 = vector.extract_strided_slice %11 {offsets = [0, 32], sizes = [8, 32], strides = [1, 1]} : vector<8x128xf32> to vector<8x32xf32>
    %cst_9 = arith.constant dense<0.000000e+00> : vector<8x8xf32>
    %20 = tpu.matmul %17, %18, %cst_9 {dimension_numbers = #tpu.dot_dimension_numbers<[1], [1], [0], [0], [0, 0, 1, 0], [], []>} : vector<8x32xf32>, vector<8x32xf32>, vector<8x8xf32> -> vector<8x8xf32>
    %cst_10 = arith.constant dense<0.000000e+00> : vector<8x32xf32>
    %21 = tpu.matmul %20, %19, %cst_10 {dimension_numbers = #tpu.dot_dimension_numbers<[1], [0], [0], [1], [0, 0, 1, 1], [], []>} : vector<8x8xf32>, vector<8x32xf32>, vector<8x32xf32> -> vector<8x32xf32>
    %22 = vector.extract_strided_slice %9 {offsets = [0, 64], sizes = [8, 32], strides = [1, 1]} : vector<8x128xf32> to vector<8x32xf32>
    %23 = vector.extract_strided_slice %10 {offsets = [0, 64], sizes = [8, 32], strides = [1, 1]} : vector<8x128xf32> to vector<8x32xf32>
    %24 = vector.extract_strided_slice %11 {offsets = [0, 64], sizes = [8, 32], strides = [1, 1]} : vector<8x128xf32> to vector<8x32xf32>
    %cst_11 = arith.constant dense<0.000000e+00> : vector<8x8xf32>
    %25 = tpu.matmul %22, %23, %cst_11 {dimension_numbers = #tpu.dot_dimension_numbers<[1], [1], [0], [0], [0, 0, 1, 0], [], []>} : vector<8x32xf32>, vector<8x32xf32>, vector<8x8xf32> -> vector<8x8xf32>
    %cst_12 = arith.constant dense<0.000000e+00> : vector<8x32xf32>
    %26 = tpu.matmul %25, %24, %cst_12 {dimension_numbers = #tpu.dot_dimension_numbers<[1], [0], [0], [1], [0, 0, 1, 1], [], []>} : vector<8x8xf32>, vector<8x32xf32>, vector<8x32xf32> -> vector<8x32xf32>
    %27 = vector.extract_strided_slice %9 {offsets = [0, 96], sizes = [8, 32], strides = [1, 1]} : vector<8x128xf32> to vector<8x32xf32>
    %28 = vector.extract_strided_slice %10 {offsets = [0, 96], sizes = [8, 32], strides = [1, 1]} : vector<8x128xf32> to vector<8x32xf32>
    %29 = vector.extract_strided_slice %11 {offsets = [0, 96], sizes = [8, 32], strides = [1, 1]} : vector<8x128xf32> to vector<8x32xf32>
    %cst_13 = arith.constant dense<0.000000e+00> : vector<8x8xf32>
    %30 = tpu.matmul %27, %28, %cst_13 {dimension_numbers = #tpu.dot_dimension_numbers<[1], [1], [0], [0], [0, 0, 1, 0], [], []>} : vector<8x32xf32>, vector<8x32xf32>, vector<8x8xf32> -> vector<8x8xf32>
    %cst_14 = arith.constant dense<0.000000e+00> : vector<8x32xf32>
    %31 = tpu.matmul %30, %29, %cst_14 {dimension_numbers = #tpu.dot_dimension_numbers<[1], [0], [0], [1], [0, 0, 1, 1], [], []>} : vector<8x8xf32>, vector<8x32xf32>, vector<8x32xf32> -> vector<8x32xf32>
    %32 = tpu.concatenate %16, %21, %26, %31 in 1 : vector<8x32xf32>, vector<8x32xf32>, vector<8x32xf32>, vector<8x32xf32> -> vector<8x128xf32>
    %c0_15 = arith.constant 0 : index
    %c0_16 = arith.constant 0 : index
    %33 = vector.load %arg4[%c0_15, %c0_16] : memref<128x32xf32, #tpu.memory_space<vmem>>, vector<128x32xf32>
    %cst_17 = arith.constant dense<0.000000e+00> : vector<8x32xf32>
    %34 = tpu.matmul %32, %33, %cst_17 {dimension_numbers = #tpu.dot_dimension_numbers<[1], [0], [0], [1], [0, 0, 1, 1], [], []>} : vector<8x128xf32>, vector<128x32xf32>, vector<8x32xf32> -> vector<8x32xf32>
    %c0_18 = arith.constant 0 : index
    %c0_19 = arith.constant 0 : index
    %35 = vector.load %arg5[%c0_18, %c0_19] : memref<1x32xf32, #tpu.memory_space<vmem>>, vector<1x32xf32>
    %36 = vector.broadcast %35 : vector<1x32xf32> to vector<8x32xf32>
    %37 = arith.addf %34, %36 : vector<8x32xf32>
    %c0_20 = arith.constant 0 : index
    %c0_21 = arith.constant 0 : index
    %c0_22 = arith.constant 0 : index
    %38 = vector.load %arg6[%c0_20, %c0_21, %c0_22] : memref<1x8x32xf32, #tpu.memory_space<vmem>>, vector<1x8x32xf32>
    %39 = vector.shape_cast %38 : vector<1x8x32xf32> to vector<8x32xf32>
    %40 = vector.shape_cast %37 : vector<8x32xf32> to vector<1x8x32xf32>
    tpu.vector_store %arg6[%c0_20, %c0_21, %c0_22], %40 {strides = array<i32>} : memref<1x8x32xf32, #tpu.memory_space<vmem>>, vector<1x8x32xf32>,
    return
  }
  func.func @transform_0(%arg0: i32) -> (i32, i32, i32) {
    %c0_i32 = arith.constant 0 : i32
    %c0_i32_0 = arith.constant 0 : i32
    %c0_i32_1 = arith.constant 0 : i32
    return %arg0, %c0_i32, %c0_i32_0 : i32, i32, i32
  }
  func.func @transform_1(%arg0: i32) -> (i32, i32) {
    %c0_i32 = arith.constant 0 : i32
    %c0_i32_0 = arith.constant 0 : i32
    %c0_i32_1 = arith.constant 0 : i32
    return %c0_i32, %c0_i32_0 : i32, i32
  }
  func.func @transform_2(%arg0: i32) -> (i32, i32) {
    %c0_i32 = arith.constant 0 : i32
    %c0_i32_0 = arith.constant 0 : i32
    %c0_i32_1 = arith.constant 0 : i32
    return %c0_i32, %c0_i32_0 : i32, i32
  }
  func.func @transform_3(%arg0: i32) -> (i32, i32) {
    %c0_i32 = arith.constant 0 : i32
    %c0_i32_0 = arith.constant 0 : i32
    %c0_i32_1 = arith.constant 0 : i32
    return %c0_i32, %c0_i32_0 : i32, i32
  }
  func.func @transform_4(%arg0: i32) -> (i32, i32) {
    %c0_i32 = arith.constant 0 : i32
    %c0_i32_0 = arith.constant 0 : i32
    %c0_i32_1 = arith.constant 0 : i32
    return %c0_i32, %c0_i32_0 : i32, i32
  }
  func.func @transform_5(%arg0: i32) -> (i32, i32, i32) {
    %c0_i32 = arith.constant 0 : i32
    %c0_i32_0 = arith.constant 0 : i32
    %c0_i32_1 = arith.constant 0 : i32
    return %arg0, %c0_i32, %c0_i32_0 : i32, i32, i32
  }
}

</mosaic_0001>

<bundles_post_ra>
// kernel: tpu_custom_call.1
= control target key start
LH: loop header
LB: loop body
LE: loop exit
PB: predicated region body
PF: predicated region fallthrough
CT: control target
= control target key end

     0   :  { %10 = vsyncpa [#allocation3], 0  ;;  %s1747_s0 = inlined_call_operand.vmem [shape: f32[2,8,32], index: 0, kind: input, shape index: {}]   ;;  %s1748_s1 = inlined_call_operand.vmem [shape: f32[32,384], index: 1, kind: input, shape index: {}]   ;;  %s1749_s2 = inlined_call_operand.vmem [shape: f32[1,384], index: 2, kind: input, shape index: {}]   ;;  %s1750_s3 = inlined_call_operand.vmem [shape: f32[128,32], index: 3, kind: input, shape index: {}]   ;;  %s1751_s4 = inlined_call_operand.vmem [shape: f32[1,32], index: 4, kind: input, shape index: {}]   ;;  %s1752_s5 = inlined_call_operand.hbm [shape: f32[2,8,32], index: 5, kind: output, shape index: {}]  }
   0x1   :  { %12 = vsyncpa [#allocation3 + $0x1], 0  ;;  %s1484_s18 = smov 0   ;;  %s1486_s19 = smov 0  }
   0x2   :  { %s1488_s20 = smov 0   ;;  %s1490_s21 = smov 0  }
   0x3 LB: > { %s1505_s22 = sadd.s32 4294967295, %s1446_s21   ;;  %s1193_s23 = sadd.s32 4294967294, %s1446_s21   ;;  %s1446_s21 = sphi %s1490_s21, %s1758_s21   ;;  %s1442_s20 = sphi %s1488_s20, %s1757_s20   ;;  %s1438_s19 = sphi %s1486_s19, %s1756_s19   ;;  %s1434_s18 = sphi %s1484_s18, %s1755_s18  }
   0x4   : > { %s1509_s24 = sadd.s32 1, %s1446_s21   ;;  %s135_s25 = sadd.s32 1, %s1442_s20 }
   0x5   : > { %s132_s26 = ssub.s32 %s1446_s21, %s1509_s24  ;;  %p145_p0 = scmp.ne.s32.totalorder %s1442_s20, %s1438_s19 }
   0x6   : > { %p133_p1 = scmp.eq.s32.totalorder %s132_s26, 0  ;;  %p146_p2 = scmp.eq.s32.totalorder %s1505_s22, 1 }
   0x7   : > { %p151_p3 = scmp.ne.s32.totalorder %s1438_s19, %s1434_s18  ;;  %p152_p4 = scmp.eq.s32.totalorder %s1193_s23, 1 }
   0x8   : > { %s1520_s27 = scalar_select %p133_p1, %s1442_s20, %s135_s25  }
   0x9   : > { %p1522_p5 = por %p146_p2, %p145_p0  ;;  %p1526_p6 = por %p152_p4, %p151_p3 }
   0xa   : > { %p1196_p7 = scmp.ge.s32.totalorder %s1446_s21, 1  ;;  %p189_p8 = scmp.lt.s32.totalorder %s1446_s21, 3 }
   0xc   : > { %p190_p9 = pnand %p1196_p7, %p189_p8 }
   0xd   : > { %p216_p10 = scmp.lt.s32.totalorder (!%p190_p9), %s1505_s22, 1  ;;  %s1451_s30 = smov (!%p190_p9), 96  }
   0xe   : > { %193 = sbr.rel (%p190_p9) target bundleno = 1144 (0x478), region = 40  ;;  %s1452_s6 = smov (!%p190_p9), 32  }
  0x13   : > { %v231_v0 = vld [vmem:[%s1748_s1 + $0x50] sm:$0xff]  ;;  %v230_v1 = vld [vmem:[%s1748_s1 + $0x48] sm:$0xff]  ;;  %v228_v2 = vld [vmem:[%s1748_s1 + $0x38] sm:$0xff]  ;;  %v1448_v4 = vmov 0.0   ;;  %s217_s15 = scalar_select %p216_p10, %s1505_s22, 1  ;;  %vm1449_vm0 = vmmov 0   ;;  %v235_v14 = vlaneseq }
  0x14   : > { %278 = vmatprep.subr.mxu1 %v231_v0  ;;  %v227_v3 = vld [vmem:[%s1748_s1 + $0x30] sm:$0xff]  ;;  %318 = vmatprep.mubr.f32.mxu1 %v1448_v4  ;;  %v225_v5 = vld [vmem:[%s1748_s1 + $0x20] sm:$0xff]  ;;  %v224_v6 = vld [vmem:[%s1748_s1 + $0x18] sm:$0xff]  ;;  %vm250_vm1 = vcmask 261120   ;;  %vm472_vm2 = vcmask 64512   ;;  %vm1022_vm3 = vcmask 523264  }
  0x15   : > { %279 = vmatpush1.msra.mxu1 %v230_v1  ;;  %1287 = vmatprep.subr.mxu0 %v1448_v4  ;;  %v222_v7 = vld [vmem:[%s1748_s1 + $0x8] sm:$0xff]  ;;  %s1198_s26 = sshll.u32 %s217_s15, 3  ;;  %v221_v8 = vld [vmem:[%s1748_s1] sm:$0xff]  ;;  %v232_v10 = vld [vmem:[%s1748_s1 + $0x58] sm:$0xff]  ;;  %v236_v15 = vshrl.u32 %v235_v14, 7  ;;  %vm1024_vm4 = vcmask 785408  }
  0x16   : > { %280 = vmatprep.subr.mxu1 %v228_v2  ;;  %1289 = vmatprep.mubr.msk.f32.mxu0 %vm1449_vm0, %v1448_v4  ;;  %s219_s9 = scalar_lea.vmem %s1747_s0, %s1198_s26  ;;  %v229_v11 = vld [vmem:[%s1748_s1 + $0x40] sm:$0xff]  ;;  %v226_v12 = vld [vmem:[%s1748_s1 + $0x28] sm:$0xff]  ;;  %v223_v13 = vld [vmem:[%s1748_s1 + $0x10] sm:$0xff]  ;;  %s1450_s26 = smov 64  }
  0x17   : > { %281 = vmatpush1.msra.mxu1 %v227_v3  ;;  %v220_v9 = vld [vmem:[%s219_s9] sm:$0xff]  ;;  %v237_v16 = vsub.s32 0, %v236_v15  ;;  %v241_v17 = vsub.s32 1, %v236_v15  ;;  %v245_v25 = vsub.s32 2, %v236_v15  ;;  %v1041_v50 = vld [vmem:[%s1750_s3 + $0x78] sm:$0xff]  ;;  %v1040_v51 = vld [vmem:[%s1750_s3 + $0x70] sm:$0xff] }
  0x18   : > { %282 = vmatprep.subr.mxu1 %v225_v5  ;;  %v233_v18 = vld [vmem:[%s1749_s2] sm:$0x7]  ;;  %v1039_v52 = vld [vmem:[%s1750_s3 + $0x68] sm:$0xff]  ;;  %v1037_v54 = vld [vmem:[%s1750_s3 + $0x58] sm:$0xff] }
  0x19   : > { %283 = vmatpush1.msra.mxu1 %v224_v6  ;;  %v238_v19 = vrot.slane %v233_v18, %v237_v16  ;;  %v242_v20 = vrot.slane %v233_v18, %v241_v17  ;;  %v246_v26 = vrot.slane %v233_v18, %v245_v25  ;;  %v1038_v53 = vld [vmem:[%s1750_s3 + $0x60] sm:$0xff]  ;;  %v1036_v55 = vld [vmem:[%s1750_s3 + $0x50] sm:$0xff]  ;;  %v1035_v56 = vld [vmem:[%s1750_s3 + $0x48] sm:$0xff] }
  0x1a   : > { %284 = vmatprep.subr.mxu1 %v222_v7  ;;  %v1034_v57 = vld [vmem:[%s1750_s3 + $0x40] sm:$0xff]  ;;  %v1033_v58 = vld [vmem:[%s1750_s3 + $0x38] sm:$0xff]  ;;  %v1032_v59 = vld [vmem:[%s1750_s3 + $0x30] sm:$0xff] }
  0x1b   : > { %285 = vmatpush1.msra.mxu1 %v221_v8  ;;  %v1031_v60 = vld [vmem:[%s1750_s3 + $0x28] sm:$0xff]  ;;  %v1030_v61 = vld [vmem:[%s1750_s3 + $0x20] sm:$0xff]  ;;  %v1029_v62 = vld [vmem:[%s1750_s3 + $0x18] sm:$0xff] }
  0x1c   : > { %1199 = vmatmul.mubr.msk.f32.vlgmr.msra.gmra.mxu1 %vm250_vm1, %v220_v9  ;;  %1256 = vmatprep.subr.mxu1 %v1448_v4  ;;  %v1028_v63 = vld [vmem:[%s1750_s3 + $0x10] sm:$0xff]  ;;  %v1027_v0 = vld [vmem:[%s1750_s3 + $0x8] sm:$0xff]  ;;  %v1026_v1 = vld [vmem:[%s1750_s3] sm:$0xff] }
  0x1d   : > { %1257 = vmatpush3.msra.mxu1 %v232_v10  ;;  %1264 = vmatprep.mubr.msk.f32.mxu1 %vm1449_vm0, %v1448_v4  ;;  %v1213_v14 = vld [vmem:[%s1751_s4] ss:$0 sm:$0xff] }
  0x1e   : > { %1258 = vmatprep.subr.mxu1 %v1448_v4 }
  0x1f   : > { %1259 = vmatpush3.msra.mxu1 %v229_v11 }
  0x20   : > { %1260 = vmatprep.subr.mxu1 %v1448_v4 }
  0x21   : > { %1261 = vmatpush3.msra.mxu1 %v226_v12 }
  0x22   : > { %1262 = vmatprep.subr.mxu1 %v1448_v4 }
  0x23   : > { %1263 = vmatpush3.msra.mxu1 %v223_v13 }
  0x24   : > { %1265 = vmatmul.mubr.msk.f32.vlgmr.msra.gmra.mxu1 %vm250_vm1, %v220_v9  ;;  %1267 = vmatprep.subr.mxu1 %v1448_v4 }
  0x25   : > { %1269 = vmatprep.mubr.msk.f32.mxu1 %vm1449_vm0, %v1448_v4 }
  0xdc   : > { %v320_v21 = vpop.f32.mrf.mxu1 }
  0xdd   : > { %v321_v23 = vadd.f32 %v320_v21, %v238_v19 }
  0xde   : > { %v322_v22 = vpop.f32.mrf.mxu1 }
  0xdf   : > { %v323_v24 = vadd.f32 %v322_v22, %v242_v20  ;;  %v395_v27 = vmul.f32 0.17677669, %v321_v23 }
  0xe1   : > { %703 = vrot.lane.b32.xlu1 %v323_v24, %s1450_s26  ;;  %548 = vrot.lane.b32.xlu0 %v323_v24, %s1451_s30 }
  0xe2   : > { %1268 = vmatpush3.xpose.msk.msra.mxu1 %vm250_vm1, %v323_v24 }
  0xe3   : > { %1272 = vmatprep.subr.mxu1 %v1448_v4 }
  0xe4   : > { %v391_v28 = vpop.f32.mrf.mxu1 }
  0xe5   : > { %1270 = vmatmul.mubr.msk.f32.vlgmr.msra.gmra.mxu1 %vm250_vm1, %v395_v27  ;;  %701 = vrot.lane.b32.xlu1 %v395_v27, %s1450_s26  ;;  %v392_v29 = vadd.f32 %v391_v28, %v246_v26 }
  0xe6   : > { %546 = vrot.lane.b32.xlu0 %v395_v27, %s1451_s30  ;;  %v1266_v30 = vpop.f32.mrf.mxu1  ;;  %1274 = vmatprep.mubr.msk.f32.mxu1 %vm1449_vm0, %v1448_v4 }
  0xe7   : > { %1273 = vmatpush3.msra.mxu1 %v392_v29 }
  0xe8   : > { %1277 = vmatprep.subr.mxu1 %v1448_v4 }
  0xe9   : > { %855 = vrot.lane.b32.xlu1 %v395_v27, %s1452_s6 }
  0xea   : > { %857 = vrot.lane.b32.xlu0 %v323_v24, %s1452_s6 }
  0xed   : > { %779 = vrot.lane.b32.xlu1 %v392_v29, %s1450_s26 }
  0xee   : > { %625 = vrot.lane.b32.xlu0 %v392_v29, %s1451_s30 }
  0xf2   : > { %933 = vrot.lane.b32.xlu0 %v392_v29, %s1452_s6 }
 0x153   : > { %v704_v31 = vpop.permute.xlu1 %703  ;;  %v549_v32 = vpop.permute.xlu0 %548 }
 0x154   : > { %1288 = vmatpush3.xpose.msk.msra.mxu0 %vm250_vm1, %v704_v31 }
 0x155   : > { %1297 = vmatprep.subr.mxu0 %v1448_v4 }
 0x157   : > { %v702_v33 = vpop.permute.xlu1 %701 }
 0x158   : > { %v547_v34 = vpop.permute.xlu0 %546  ;;  %1290 = vmatmul.mubr.msk.f32.vlgmr.msra.gmra.mxu0 %vm250_vm1, %v702_v33 }
 0x159   : > { %1299 = vmatprep.mubr.msk.f32.mxu0 %vm1449_vm0, %v1448_v4 }
 0x15b   : > { %v856_v36 = vpop.permute.xlu1 %855 }
 0x15c   : > { %v858_v35 = vpop.permute.xlu0 %857 }
 0x15d   : > { %1298 = vmatpush3.xpose.msk.msra.mxu0 %vm250_vm1, %v858_v35 }
 0x15e   : > { %1307 = vmatprep.subr.mxu0 %v1448_v4 }
 0x15f   : > { %v780_v47 = vpop.permute.xlu1 %779 }
 0x160   : > { %1300 = vmatmul.mubr.msk.f32.vlgmr.msra.gmra.mxu0 %vm250_vm1, %v856_v36  ;;  %v626_v39 = vpop.permute.xlu0 %625 }
 0x161   : > { %1339 = vmatprep.mubr.msk.f32.mxu0 %vm1449_vm0, %v1448_v4  ;;  %1308 = vmatpush3.msra.mxu0 %v1041_v50 }
 0x162   : > { %1309 = vmatprep.subr.mxu0 %v1448_v4 }
 0x163   : > { %1310 = vmatpush3.msra.mxu0 %v1040_v51 }
 0x164   : > { %v934_v49 = vpop.permute.xlu0 %933  ;;  %1311 = vmatprep.subr.mxu0 %v1448_v4 }
 0x165   : > { %1312 = vmatpush3.msra.mxu0 %v1039_v52 }
 0x166   : > { %1313 = vmatprep.subr.mxu0 %v1448_v4 }
 0x167   : > { %1314 = vmatpush3.msra.mxu0 %v1038_v53 }
 0x168   : > { %1315 = vmatprep.subr.mxu0 %v1448_v4 }
 0x169   : > { %1316 = vmatpush3.msra.mxu0 %v1037_v54 }
 0x16a   : > { %1317 = vmatprep.subr.mxu0 %v1448_v4 }
 0x16b   : > { %1318 = vmatpush3.msra.mxu0 %v1036_v55 }
 0x16c   : > { %1319 = vmatprep.subr.mxu0 %v1448_v4 }
 0x16d   : > { %1320 = vmatpush3.msra.mxu0 %v1035_v56 }
 0x16e   : > { %1321 = vmatprep.subr.mxu0 %v1448_v4 }
 0x16f   : > { %1322 = vmatpush3.msra.mxu0 %v1034_v57 }
 0x170   : > { %1323 = vmatprep.subr.mxu0 %v1448_v4 }
 0x171   : > { %1324 = vmatpush3.msra.mxu0 %v1033_v58 }
 0x172   : > { %1325 = vmatprep.subr.mxu0 %v1448_v4 }
 0x173   : > { %1326 = vmatpush3.msra.mxu0 %v1032_v59 }
 0x174   : > { %1327 = vmatprep.subr.mxu0 %v1448_v4 }
 0x175   : > { %1328 = vmatpush3.msra.mxu0 %v1031_v60 }
 0x176   : > { %1329 = vmatprep.subr.mxu0 %v1448_v4 }
 0x177   : > { %1330 = vmatpush3.msra.mxu0 %v1030_v61 }
 0x178   : > { %1331 = vmatprep.subr.mxu0 %v1448_v4 }
 0x179   : > { %1332 = vmatpush3.msra.mxu0 %v1029_v62 }
 0x17a   : > { %1333 = vmatprep.subr.mxu0 %v1448_v4 }
 0x17b   : > { %1334 = vmatpush3.msra.mxu0 %v1028_v63 }
 0x17c   : > { %1335 = vmatprep.subr.mxu0 %v1448_v4 }
 0x17d   : > { %1336 = vmatpush3.msra.mxu0 %v1027_v0 }
 0x17e   : > { %1337 = vmatprep.subr.mxu0 %v1448_v4 }
 0x17f   : > { %1338 = vmatpush3.msra.mxu0 %v1026_v1 }
 0x1a5   : > { %v468_v37 = vpop.f32.mrf.mxu1 }
 0x1a6   : > { %1275 = vmatmul.mubr.msk.f32.vlgmr.msra.gmra.mxu1 %vm472_vm2, %v468_v37 }
 0x1a7   : > { %1278 = vmatpush3.xpose.msk.msra.mxu1 %vm250_vm1, %v549_v32  ;;  %v1271_v38 = vpop.f32.mrf.mxu1  ;;  %1279 = vmatprep.mubr.msk.f32.mxu1 %vm1449_vm0, %v1448_v4 }
 0x1a8   : > { %1282 = vmatprep.subr.mxu1 %v1448_v4 }
 0x1aa   : > { %1280 = vmatmul.mubr.msk.f32.vlgmr.msra.gmra.mxu1 %vm250_vm1, %v547_v34 }
 0x1ab   : > { %1283 = vmatpush3.msra.mxu1 %v626_v39  ;;  %1284 = vmatprep.mubr.msk.f32.mxu1 %vm1449_vm0, %v1448_v4 }
 0x1ac   : > { %1292 = vmatprep.subr.mxu1 %v1448_v4 }
 0x218   : > { %v775_v40 = vpop.f32.mrf.mxu0 }
 0x21a   : > { %v1291_v41 = vpop.f32.mrf.mxu0 }
 0x220   : > { %v929_v42 = vpop.f32.mrf.mxu0 }
 0x222   : > { %v1301_v43 = vpop.f32.mrf.mxu0 }
 0x266   : > { %v1625_v44 = vpop.f32.mrf.mxu1 }
 0x268   : > { %v1276_v45 = vpop.f32.mrf.mxu1 }
 0x26a   : > { %v620_v46 = vpop.f32.mrf.mxu1 }
 0x26b   : > { %1285 = vmatmul.mubr.msk.f32.vlgmr.msra.gmra.mxu1 %vm472_vm2, %v620_v46 }
 0x26c   : > { %1293 = vmatpush3.msra.mxu1 %v780_v47  ;;  %v1281_v48 = vpop.f32.mrf.mxu1  ;;  %1294 = vmatprep.mubr.msk.f32.mxu1 %vm1449_vm0, %v1448_v4 }
 0x26d   : > { %1302 = vmatprep.subr.mxu1 %v1448_v4 }
 0x26f   : > { %1295 = vmatmul.mubr.msk.f32.vlgmr.msra.gmra.mxu1 %vm472_vm2, %v775_v40 }
 0x270   : > { %1303 = vmatpush3.msra.mxu1 %v934_v49  ;;  %1304 = vmatprep.mubr.msk.f32.mxu1 %vm1449_vm0, %v1448_v4 }
 0x273   : > { %1305 = vmatmul.mubr.msk.f32.vlgmr.msra.gmra.mxu1 %vm472_vm2, %v929_v42 }
 0x32b   : > { %v697_v2 = vpop.f32.mrf.mxu1 }
 0x32c   : > { %1010 = vrot.lane.b32.xlu1 %v697_v2, %s1452_s6  ;;  %s213_s6 = sand.u32 1, %s1438_s19  }
 0x32d   : > { %v1286_v3 = vpop.f32.mrf.mxu1  ;;  %s1121_s7 = scalar_lea.sflag [#allocation3], %s213_s6 }
 0x32f   : > { %v851_v5 = vpop.f32.mrf.mxu1 }
 0x330   : > { %1014 = vrot.lane.b32.xlu0 %v851_v5, %s1450_s26  ;;  %s1197_s26 = sshll.u32 %s213_s6, 3 }
 0x331   : > { %v1296_v6 = vpop.f32.mrf.mxu1  ;;  %s215_s15 = scalar_lea.vmem [#allocation2], %s1197_s26 }
 0x332   : > { %s1134_s16 = sshll.u32 %s215_s15, 4  ;;  %s1135_s16 = int_to_ptr.vmem [resolvable:$true] %s1134_s16 }
 0x333   : > { %v1005_v7 = vpop.f32.mrf.mxu1  ;;  %s1386_s8 = scalar_lea.vmem %s1135_s16, 128 }
 0x334   : > { %1018 = vrot.lane.b32.xlu1 %v1005_v7, %s1451_s30  ;;  %s1215_s30 = sshll.u32 %s1505_s22, 7  ;;  %p1387_p11 = scmp.ne.s32.totalorder %s1135_s16, %s1386_s8 }
 0x335   : > { %v1306_v8 = vpop.f32.mrf.mxu1  ;;  %s1711_s25 = scalar_lea.hbm %s1752_s5, %s1215_s30  ;;  %s1453_s22 = smov [#allocation2]  }
 0x336   : > { %p1388_p12 = pnand %p1387_p11, %p1522_p5  ;;  %s1390_s9 = sshll.u32 %s1453_s22, 4  ;;  %s1391_s9 = int_to_ptr.vmem [resolvable:$false] %s1390_s9 }
 0x337   : > { %s1392_s10 = scalar_lea.vmem %s1391_s9, 256  ;;  %p1393_p0 = scmp.lt.s32.totalorder %s1135_s16, %s1391_s9 }
 0x338   : > { %p1389_p13 = pneg %p1388_p12  ;;  %p1394_p1 = scmp.lt.s32.totalorder %s1392_s10, %s1386_s8 }
 0x33a   : > { %p1395_p2 = por %p1394_p1, %p1393_p0 }
 0x33c   : > { %p1396_p3 = pnand %p1395_p2, %p1389_p13 }
 0x39e   : > { %v1011_v4 = vpop.permute.xlu1 %1010 }
 0x39f   : > { %v1021_v10 = vsel %vm250_vm1, %v1625_v44, %v1011_v4 }
 0x3a2   : > { %v1015_v9 = vpop.permute.xlu0 %1014 }
 0x3a3   : > { %v1023_v11 = vsel %vm1022_vm3, %v1021_v10, %v1015_v9 }
 0x3a6   : > { %v1019_v12 = vpop.permute.xlu1 %1018 }
 0x3a7   : > { %v1025_v13 = vsel %vm1024_vm4, %v1023_v11, %v1019_v12 }
 0x3a8   : > { %1340 = vmatmul.mubr.f32.vlgmr.msra.gmra.mxu0 %v1025_v13 }
 0x468   : > { %v1115_v15 = vpop.f32.mrf.mxu0 }
 0x469   : > { %v1116_v16 = vadd.f32 %v1213_v14, %v1115_v15 }
 0x46a   : > { %v1341_v17 = vpop.f32.mrf.mxu0 }
 0x46b   : > { %1119 = vst.msk [vmem:[%s215_s15] sm:$0xff] %vm250_vm1, %v1116_v16 }
 0x46c   : > { %1399 = shalt.err (!%p1396_p3)
}
 0x46d   : > { %s1400_s11 = scalar_lea.hbm %s1711_s25, 128  ;;  %s1404_s26 = scalar_lea.hbm %s1752_s5, 256 }
 0x46e   : > { %p1401_p4 = scmp.ne.s32.totalorder %s1711_s25, %s1400_s11  ;;  %p1405_p9 = scmp.lt.s32.totalorder %s1711_s25, %s1752_s5 }
 0x46f   : > { %p1406_p10 = scmp.lt.s32.totalorder %s1404_s26, %s1400_s11 }
 0x470   : > { %p1402_p7 = pnand %p1401_p4, %p1522_p5 }
 0x471   : > { %p1407_p11 = por %p1406_p10, %p1405_p9 }
 0x472   : > { %p1403_p8 = pneg %p1402_p7 }
 0x474   : > { %p1408_p12 = pnand %p1407_p11, %p1403_p8 }
 0x476   : > { %1411 = shalt.err (!%p1408_p12)
}
 0x477   : > { %1342 = dma.vmem_to_hbm [thread:$0]  (%p1522_p5), %s1135_s16, 128, %s1711_s25, %s1121_s7  }
 0x478 PF: > { %p1348_p13 = scmp.ge.s32.totalorder %s1446_s21, 2  ;;  %s1146_s30 = sand.u32 1, %s1434_s18  }
 0x479   : > { %s1147_s15 = scalar_lea.sflag [#allocation3], %s1146_s30 }
 0x47a   : > { %p1345_p0 = pnand %p1348_p13, %p1526_p6 }
 0x47c   : > { %p1346_p1 = pneg %p1345_p0 }
 0x47e   : > { %1429 = dma.done.wait (%p1346_p1), %s1147_s15, 128  }
 0x47f   : > { %1431 = vsyncadd (%p1346_p1), %s1147_s15, 4294967168  ;;  %p15_p2 = scmp.ge.s32.totalorder %s1509_s24, 4   ;;  %s1755_s18 = smov %s1438_s19 }
 0x480   : > { %s1756_s19 = smov %s1442_s20  ;;  %s1757_s20 = smov %s1520_s27 }
 0x481   : > { %s1758_s21 = smov %s1509_s24  ;;  %17 = sbr.rel (!%p15_p2) target bundleno = 3 (0x3), region = 75 }
 0x486   :  { %1152 = vsyncpa [#allocation3], 1 }
 0x487   :  { %1154 = vsyncpa [#allocation3 + $0x1], 1 }

</bundles_post_ra>
